<compile_context>
chip_gen: v5e
topology: v5e:2x2
jax: 0.10.0
libtpu: 0.0.40
codegen_flags: <defaults>
</compile_context>

<pallas_src>
import functools

import jax
import jax.numpy as jnp
import numpy as np
from jax.experimental import pallas as pl
from jax.experimental.pallas import tpu as pltpu


def _layernorm(x, w, b, eps=1e-5):
    # PyTorch LayerNorm: biased variance, eps inside sqrt.  f32 math.
    mu = jnp.mean(x, axis=-1, keepdims=True)
    var = jnp.mean((x - mu) ** 2, axis=-1, keepdims=True)
    return (x - mu) * jax.lax.rsqrt(var + eps) * w + b


def _quick_gelu(x):
    return x * jax.nn.sigmoid(1.702 * x)


def residual_attention_block_kernel(
    x_ref,                         # (NB, L, D)  f32
    ln1_w_ref, ln1_b_ref,          # (1, D) f32
    w_in_ref, b_in_ref,            # (D, 3D) bf16, (1, 3D) f32
    w_out_ref, b_out_ref,          # (D, D)  bf16, (1, D)  f32
    ln2_w_ref, ln2_b_ref,          # (1, D) f32
    w_fc_ref, b_fc_ref,            # (D, 4D) bf16, (1, 4D) f32
    w_proj_ref, b_proj_ref,        # (4D, D) bf16, (1, D)  f32
    o_ref,                         # (NB, L, D)  f32
    *, n_head,
):
    NB, L, D = x_ref.shape
    H = n_head
    Hd = D // H
    scale = 1.0 / float(np.sqrt(Hd))

    x = x_ref[...].reshape(NB * L, D)                         # token-major slab, f32

    # ---- x + attn(ln_1(x)) -------------------------------------------------
    y = _layernorm(x, ln1_w_ref[...], ln1_b_ref[...])         # (NB*L, D) f32
    qkv = jnp.dot(y.astype(jnp.bfloat16), w_in_ref[...],
                  preferred_element_type=jnp.float32) + b_in_ref[...]

    def split_heads(t):  # (NB*L, D) -> (NB*H, L, Hd)
        t = t.reshape(NB, L, H, Hd)
        t = jnp.transpose(t, (0, 2, 1, 3))
        return t.reshape(NB * H, L, Hd)

    q = split_heads((qkv[:, 0:D] * scale).astype(jnp.bfloat16))
    k = split_heads(qkv[:, D:2 * D].astype(jnp.bfloat16))
    v = split_heads(qkv[:, 2 * D:3 * D].astype(jnp.bfloat16))

    # (batch*head)-batched QK^T: (NB*H, L, L), f32 accumulation.
    s = jnp.einsum("bqd,bkd->bqk", q, k, preferred_element_type=jnp.float32)
    s = s - jnp.max(s, axis=-1, keepdims=True)
    p = jnp.exp(s)                                            # unnormalized, in (0, 1]
    l = jnp.sum(p, axis=-1, keepdims=True)                    # (NB*H, L, 1)

    # (batch*head)-batched P.V, normalize afterwards on the small context.
    ctx = jnp.einsum("bqk,bkd->bqd", p.astype(jnp.bfloat16), v,
                     preferred_element_type=jnp.float32)      # (NB*H, L, Hd)
    ctx = ctx * pl.reciprocal(l, approx=True)
    ctx = jnp.transpose(ctx.reshape(NB, H, L, Hd), (0, 2, 1, 3)).reshape(NB * L, D)

    attn = jnp.dot(ctx.astype(jnp.bfloat16), w_out_ref[...],
                   preferred_element_type=jnp.float32) + b_out_ref[...]
    x1 = x + attn                                             # residual 1 (f32)

    # ---- x + mlp(ln_2(x)) ----------------------------------------------------
    z = _layernorm(x1, ln2_w_ref[...], ln2_b_ref[...])
    h = jnp.dot(z.astype(jnp.bfloat16), w_fc_ref[...],
                preferred_element_type=jnp.float32) + b_fc_ref[...]
    h = _quick_gelu(h)                                        # f32
    mlp = jnp.dot(h.astype(jnp.bfloat16), w_proj_ref[...],
                  preferred_element_type=jnp.float32) + b_proj_ref[...]

    o_ref[...] = (x1 + mlp).reshape(NB, L, D)                 # residual 2 (f32)


def _pick_batch_block(N, L, D, n_head, act_budget_bytes=8 * 1024 * 1024):
    """Largest divisor of N whose in-kernel activations fit a small VMEM budget,
    while keeping >=2 grid steps (megacore sharding) whenever N > 1."""
    # rough f32 bytes per batch element: x/y/x1/z residual temps, qkv, mlp hidden,
    # and the (H, L, L) scores/probs.
    per_b = 4 * (6 * L * D + 3 * L * D + 8 * L * D + 2 * n_head * L * L)
    cap = max(1, act_budget_bytes // max(per_b, 1))
    if N > 1:
        cap = min(cap, N // 2)
    cap = max(1, min(cap, N))
    nb = 1
    for d in range(1, cap + 1):
        if N % d == 0:
            nb = d
    return nb


def residual_attention_block(x_nld, params, n_head, *, batch_block=None,
                             vmem_limit_bytes=48 * 1024 * 1024):
    """One residual attention block.  x_nld: (N, L, D) float32."""
    N, L, D = x_nld.shape
    NB = batch_block if batch_block is not None else _pick_batch_block(N, L, D, n_head)
    assert N % NB == 0, (N, NB)

    def f32(a, shape):
        return a.astype(jnp.float32).reshape(shape)

    def bf16(a):
        return a.astype(jnp.bfloat16)

    args = (
        x_nld.astype(jnp.float32),
        f32(params["ln1_w"], (1, D)),        f32(params["ln1_b"], (1, D)),
        bf16(params["in_proj_weight"].T),    f32(params["in_proj_bias"], (1, 3 * D)),
        bf16(params["out_proj_weight"].T),   f32(params["out_proj_bias"], (1, D)),
        f32(params["ln2_w"], (1, D)),        f32(params["ln2_b"], (1, D)),
        bf16(params["c_fc_weight"].T),       f32(params["c_fc_bias"], (1, 4 * D)),
        bf16(params["c_proj_weight"].T),     f32(params["c_proj_bias"], (1, D)),
    )

    def const_spec(a):
        zeros = (0,) * a.ndim
        return pl.BlockSpec(a.shape, lambda n, _z=zeros: _z)  # VMEM-resident weight

    in_specs = [pl.BlockSpec((NB, L, D), lambda n: (n, 0, 0))]
    in_specs += [const_spec(a) for a in args[1:]]

    kernel = functools.partial(residual_attention_block_kernel, n_head=n_head)
    return pl.pallas_call(
        kernel,
        out_shape=jax.ShapeDtypeStruct((N, L, D), jnp.float32),
        grid=(N // NB,),
        in_specs=in_specs,
        out_specs=pl.BlockSpec((NB, L, D), lambda n: (n, 0, 0)),
        compiler_params=pltpu.CompilerParams(
            dimension_semantics=("parallel",),   # batch sharded across TCs on v7x
            vmem_limit_bytes=vmem_limit_bytes,   # explicit budget (v7x: 64 MiB phys)
        ),
    )(*args)


def transformer_forward(x_lnd, layer_params, n_head):
    """Transformer forward.  x_lnd: (L, N, D) — torch nn.MultiheadAttention layout."""
    # Single layout change for the whole stack (not per layer).
    x = jnp.transpose(x_lnd, (1, 0, 2)).astype(jnp.float32)   # (N, L, D)
    for p in layer_params:
        x = residual_attention_block(x, p, n_head)
    return jnp.transpose(x, (1, 0, 2))


# ---------------------------------------------------------------------------
# Pure-JAX fp32 reference (mirrors torch semantics) for a correctness check.
# ---------------------------------------------------------------------------
def reference_block(x_lnd, params, n_head):
    L, N, D = x_lnd.shape
    Hd = D // n_head

    def ln(x, w, b):
        mu = jnp.mean(x, axis=-1, keepdims=True)
        var = jnp.mean((x - mu) ** 2, axis=-1, keepdims=True)
        return (x - mu) / jnp.sqrt(var + 1e-5) * w + b

    y = ln(x_lnd, params["ln1_w"], params["ln1_b"])
    qkv = jnp.einsum("lnd,ed->lne", y, params["in_proj_weight"]) + params["in_proj_bias"]
    q, k, v = qkv[..., :D], qkv[..., D:2 * D], qkv[..., 2 * D:]

    def split_heads(t):  # (L, N, D) -> (N, H, L, Hd)
        return jnp.transpose(t.reshape(L, N, n_head, Hd), (1, 2, 0, 3))

    qh, kh, vh = split_heads(q), split_heads(k), split_heads(v)
    s = jnp.einsum("nhld,nhmd->nhlm", qh, kh) / jnp.sqrt(Hd)
    p = jax.nn.softmax(s, axis=-1)
    ctx = jnp.einsum("nhlm,nhmd->nhld", p, vh)
    ctx = jnp.transpose(ctx, (2, 0, 1, 3)).reshape(L, N, D)
    attn = jnp.einsum("lnd,ed->lne", ctx, params["out_proj_weight"]) + params["out_proj_bias"]
    x1 = x_lnd + attn

    z = ln(x1, params["ln2_w"], params["ln2_b"])
    h = jnp.einsum("lnd,ed->lne", z, params["c_fc_weight"]) + params["c_fc_bias"]
    h = h * jax.nn.sigmoid(1.702 * h)
    mlp = jnp.einsum("lne,de->lnd", h, params["c_proj_weight"]) + params["c_proj_bias"]
    return x1 + mlp


def reference_transformer(x_lnd, layer_params, n_head):
    for p in layer_params:
        x_lnd = reference_block(x_lnd, p, n_head)
    return x_lnd


def init_block_params(key, d_model):
    ks = jax.random.split(key, 8)
    std = 0.02
    return {
        # torch layouts: Linear weight is (out_features, in_features)
        "in_proj_weight": jax.random.normal(ks[0], (3 * d_model, d_model), jnp.float32) * std,
        "in_proj_bias":   jax.random.normal(ks[1], (3 * d_model,), jnp.float32) * std,
        "out_proj_weight": jax.random.normal(ks[2], (d_model, d_model), jnp.float32) * std,
        "out_proj_bias":   jax.random.normal(ks[3], (d_model,), jnp.float32) * std,
        "ln1_w": jnp.ones((d_model,), jnp.float32),
        "ln1_b": jnp.zeros((d_model,), jnp.float32),
        "ln2_w": jnp.ones((d_model,), jnp.float32),
        "ln2_b": jnp.zeros((d_model,), jnp.float32),
        "c_fc_weight": jax.random.normal(ks[4], (4 * d_model, d_model), jnp.float32) * std,
        "c_fc_bias":   jax.random.normal(ks[5], (4 * d_model,), jnp.float32) * std,
        "c_proj_weight": jax.random.normal(ks[6], (d_model, 4 * d_model), jnp.float32) * std,
        "c_proj_bias":   jax.random.normal(ks[7], (d_model,), jnp.float32) * std,
    }


if __name__ == "__main__":
    L, N, D, H, LAYERS = 8, 2, 32, 4, 2   # seq, batch, width, heads, layers
    key = jax.random.PRNGKey(0)
    kx, kp = jax.random.split(key)
    x = jax.random.normal(kx, (L, N, D), jnp.float32)
    layer_params = [init_block_params(k, D) for k in jax.random.split(kp, LAYERS)]

    out = jax.block_until_ready(transformer_forward(x, layer_params, n_head=H))
    ref = jax.block_until_ready(reference_transformer(x, layer_params, H))

    assert out.shape == (L, N, D)
    # bf16 MXU inputs with f32 accumulation vs. fp32 reference -> modest tolerance.
    assert np.allclose(np.asarray(out), np.asarray(ref), atol=1e-2, rtol=1e-2)

    print("KERNEL_OK")
</pallas_src>

<mosaic_0001>
module attributes {stable_mosaic.version = 11 : i64} {
  func.func @residual_attention_block_kernel(%arg0: i32, %arg1: memref<1x8x32xf32, #tpu.memory_space<vmem>>, %arg2: memref<1x32xf32, #tpu.memory_space<vmem>>, %arg3: memref<1x32xf32, #tpu.memory_space<vmem>>, %arg4: memref<32x96xbf16, #tpu.memory_space<vmem>>, %arg5: memref<1x96xf32, #tpu.memory_space<vmem>>, %arg6: memref<32x32xbf16, #tpu.memory_space<vmem>>, %arg7: memref<1x32xf32, #tpu.memory_space<vmem>>, %arg8: memref<1x32xf32, #tpu.memory_space<vmem>>, %arg9: memref<1x32xf32, #tpu.memory_space<vmem>>, %arg10: memref<32x128xbf16, #tpu.memory_space<vmem>>, %arg11: memref<1x128xf32, #tpu.memory_space<vmem>>, %arg12: memref<128x32xbf16, #tpu.memory_space<vmem>>, %arg13: memref<1x32xf32, #tpu.memory_space<vmem>>, %arg14: memref<1x8x32xf32, #tpu.memory_space<vmem>>) attributes {dimension_semantics = [#tpu.dimension_semantics<parallel>], iteration_bounds = array<i64: 2>, scalar_prefetch = 0 : i64, scratch_operands = 0 : i64, tpu.core_type = #tpu.core_type<tc>, window_params = [{transform_indices = @transform_0, window_bounds = array<i64: 1, 8, 32>}, {pipeline_mode = #tpu.pipeline_mode<synchronous>, transform_indices = @transform_1, window_bounds = array<i64: 1, 32>}, {pipeline_mode = #tpu.pipeline_mode<synchronous>, transform_indices = @transform_2, window_bounds = array<i64: 1, 32>}, {pipeline_mode = #tpu.pipeline_mode<synchronous>, transform_indices = @transform_3, window_bounds = array<i64: 32, 96>}, {pipeline_mode = #tpu.pipeline_mode<synchronous>, transform_indices = @transform_4, window_bounds = array<i64: 1, 96>}, {pipeline_mode = #tpu.pipeline_mode<synchronous>, transform_indices = @transform_5, window_bounds = array<i64: 32, 32>}, {pipeline_mode = #tpu.pipeline_mode<synchronous>, transform_indices = @transform_6, window_bounds = array<i64: 1, 32>}, {pipeline_mode = #tpu.pipeline_mode<synchronous>, transform_indices = @transform_7, window_bounds = array<i64: 1, 32>}, {pipeline_mode = #tpu.pipeline_mode<synchronous>, transform_indices = @transform_8, window_bounds = array<i64: 1, 32>}, {pipeline_mode = #tpu.pipeline_mode<synchronous>, transform_indices = @transform_9, window_bounds = array<i64: 32, 128>}, {pipeline_mode = #tpu.pipeline_mode<synchronous>, transform_indices = @transform_10, window_bounds = array<i64: 1, 128>}, {pipeline_mode = #tpu.pipeline_mode<synchronous>, transform_indices = @transform_11, window_bounds = array<i64: 128, 32>}, {pipeline_mode = #tpu.pipeline_mode<synchronous>, transform_indices = @transform_12, window_bounds = array<i64: 1, 32>}, {transform_indices = @transform_13, window_bounds = array<i64: 1, 8, 32>}]} {
    %c0 = arith.constant 0 : index
    %c0_0 = arith.constant 0 : index
    %c0_1 = arith.constant 0 : index
    %0 = vector.load %arg1[%c0, %c0_0, %c0_1] : memref<1x8x32xf32, #tpu.memory_space<vmem>>, vector<1x8x32xf32>
    %1 = vector.shape_cast %0 : vector<1x8x32xf32> to vector<8x32xf32>
    %c0_2 = arith.constant 0 : index
    %c0_3 = arith.constant 0 : index
    %2 = vector.load %arg2[%c0_2, %c0_3] : memref<1x32xf32, #tpu.memory_space<vmem>>, vector<1x32xf32>
    %c0_4 = arith.constant 0 : index
    %c0_5 = arith.constant 0 : index
    %3 = vector.load %arg3[%c0_4, %c0_5] : memref<1x32xf32, #tpu.memory_space<vmem>>, vector<1x32xf32>
    %cst = arith.constant dense<0.000000e+00> : vector<8xf32>
    %4 = vector.multi_reduction <add>, %1, %cst [1] : vector<8x32xf32> to vector<8xf32>
    %5 = vector.shape_cast %4 : vector<8xf32> to vector<8x1xf32>
    %cst_6 = arith.constant 3.200000e+01 : f32
    %6 = vector.broadcast %cst_6 : f32 to vector<8x1xf32>
    %7 = arith.divf %5, %6 : vector<8x1xf32>
    %8 = vector.broadcast %7 : vector<8x1xf32> to vector<8x32xf32>
    %9 = arith.subf %1, %8 : vector<8x32xf32>
    %10 = arith.mulf %9, %9 : vector<8x32xf32>
    %cst_7 = arith.constant dense<0.000000e+00> : vector<8xf32>
    %11 = vector.multi_reduction <add>, %10, %cst_7 [1] : vector<8x32xf32> to vector<8xf32>
    %12 = vector.shape_cast %11 : vector<8xf32> to vector<8x1xf32>
    %cst_8 = arith.constant 3.200000e+01 : f32
    %13 = vector.broadcast %cst_8 : f32 to vector<8x1xf32>
    %14 = arith.divf %12, %13 : vector<8x1xf32>
    %15 = vector.broadcast %7 : vector<8x1xf32> to vector<8x32xf32>
    %16 = arith.subf %1, %15 : vector<8x32xf32>
    %cst_9 = arith.constant 9.99999974E-6 : f32
    %17 = vector.broadcast %cst_9 : f32 to vector<8x1xf32>
    %18 = arith.addf %14, %17 : vector<8x1xf32>
    %19 = math.rsqrt %18 : vector<8x1xf32>
    %20 = vector.broadcast %19 : vector<8x1xf32> to vector<8x32xf32>
    %21 = arith.mulf %16, %20 : vector<8x32xf32>
    %22 = vector.broadcast %2 : vector<1x32xf32> to vector<8x32xf32>
    %23 = arith.mulf %21, %22 : vector<8x32xf32>
    %24 = vector.broadcast %3 : vector<1x32xf32> to vector<8x32xf32>
    %25 = arith.addf %23, %24 : vector<8x32xf32>
    %26 = arith.truncf %25 : vector<8x32xf32> to vector<8x32xbf16>
    %c0_10 = arith.constant 0 : index
    %c0_11 = arith.constant 0 : index
    %27 = vector.load %arg4[%c0_10, %c0_11] : memref<32x96xbf16, #tpu.memory_space<vmem>>, vector<32x96xbf16>
    %cst_12 = arith.constant dense<0.000000e+00> : vector<8x96xf32>
    %28 = tpu.matmul %26, %27, %cst_12 {dimension_numbers = #tpu.dot_dimension_numbers<[1], [0], [0], [1], [0, 0, 1, 1], [], []>} : vector<8x32xbf16>, vector<32x96xbf16>, vector<8x96xf32> -> vector<8x96xf32>
    %c0_13 = arith.constant 0 : index
    %c0_14 = arith.constant 0 : index
    %29 = vector.load %arg5[%c0_13, %c0_14] : memref<1x96xf32, #tpu.memory_space<vmem>>, vector<1x96xf32>
    %30 = vector.broadcast %29 : vector<1x96xf32> to vector<8x96xf32>
    %31 = arith.addf %28, %30 : vector<8x96xf32>
    %32 = vector.extract_strided_slice %31 {offsets = [0, 0], sizes = [8, 32], strides = [1, 1]} : vector<8x96xf32> to vector<8x32xf32>
    %cst_15 = arith.constant 0.353553385 : f32
    %33 = vector.broadcast %cst_15 : f32 to vector<8x32xf32>
    %34 = arith.mulf %32, %33 : vector<8x32xf32>
    %35 = arith.truncf %34 : vector<8x32xf32> to vector<8x32xbf16>
    %36 = vector.shape_cast %35 : vector<8x32xbf16> to vector<1x8x4x8xbf16>
    %37 = tpu.transpose %36, [0, 2, 1, 3] : vector<1x8x4x8xbf16> -> vector<1x4x8x8xbf16>
    %38 = vector.shape_cast %37 : vector<1x4x8x8xbf16> to vector<4x8x8xbf16>
    %39 = vector.extract_strided_slice %31 {offsets = [0, 32], sizes = [8, 32], strides = [1, 1]} : vector<8x96xf32> to vector<8x32xf32>
    %40 = arith.truncf %39 : vector<8x32xf32> to vector<8x32xbf16>
    %41 = vector.shape_cast %40 : vector<8x32xbf16> to vector<1x8x4x8xbf16>
    %42 = tpu.transpose %41, [0, 2, 1, 3] : vector<1x8x4x8xbf16> -> vector<1x4x8x8xbf16>
    %43 = vector.shape_cast %42 : vector<1x4x8x8xbf16> to vector<4x8x8xbf16>
    %44 = vector.extract_strided_slice %31 {offsets = [0, 64], sizes = [8, 32], strides = [1, 1]} : vector<8x96xf32> to vector<8x32xf32>
    %45 = arith.truncf %44 : vector<8x32xf32> to vector<8x32xbf16>
    %46 = vector.shape_cast %45 : vector<8x32xbf16> to vector<1x8x4x8xbf16>
    %47 = tpu.transpose %46, [0, 2, 1, 3] : vector<1x8x4x8xbf16> -> vector<1x4x8x8xbf16>
    %48 = vector.shape_cast %47 : vector<1x4x8x8xbf16> to vector<4x8x8xbf16>
    "tpu.trace_start"() <{level = 10 : i32, message = "bqd,bkd->bqk"}> : () -> ()
    %cst_16 = arith.constant dense<0.000000e+00> : vector<4x8x8xf32>
    %49 = tpu.matmul %38, %43, %cst_16 {dimension_numbers = #tpu.dot_dimension_numbers<[2], [2], [1], [1], [0, 0, 0, 1, 1, 1], [0], [0]>} : vector<4x8x8xbf16>, vector<4x8x8xbf16>, vector<4x8x8xf32> -> vector<4x8x8xf32>
    "tpu.trace_stop"() : () -> ()
    %cst_17 = arith.constant dense<0xFF800000> : vector<4x8xf32>
    %50 = vector.multi_reduction <maximumf>, %49, %cst_17 [2] : vector<4x8x8xf32> to vector<4x8xf32>
    %51 = vector.shape_cast %50 : vector<4x8xf32> to vector<4x8x1xf32>
    %52 = vector.broadcast %51 : vector<4x8x1xf32> to vector<4x8x8xf32>
    %53 = arith.subf %49, %52 : vector<4x8x8xf32>
    %54 = math.exp %53 : vector<4x8x8xf32>
    %cst_18 = arith.constant dense<0.000000e+00> : vector<4x8xf32>
    %55 = vector.multi_reduction <add>, %54, %cst_18 [2] : vector<4x8x8xf32> to vector<4x8xf32>
    %56 = vector.shape_cast %55 : vector<4x8xf32> to vector<4x8x1xf32>
    %57 = arith.truncf %54 : vector<4x8x8xf32> to vector<4x8x8xbf16>
    "tpu.trace_start"() <{level = 10 : i32, message = "bqk,bkd->bqd"}> : () -> ()
    %cst_19 = arith.constant dense<0.000000e+00> : vector<4x8x8xf32>
    %58 = tpu.matmul %57, %48, %cst_19 {dimension_numbers = #tpu.dot_dimension_numbers<[2], [1], [1], [2], [0, 0, 0, 1, 1, 2], [0], [0]>} : vector<4x8x8xbf16>, vector<4x8x8xbf16>, vector<4x8x8xf32> -> vector<4x8x8xf32>
    "tpu.trace_stop"() : () -> ()
    %59 = tpu.reciprocal %56 {approx = true} : vector<4x8x1xf32> -> vector<4x8x1xf32>
    %60 = vector.broadcast %59 : vector<4x8x1xf32> to vector<4x8x8xf32>
    %61 = arith.mulf %58, %60 : vector<4x8x8xf32>
    %62 = vector.shape_cast %61 : vector<4x8x8xf32> to vector<1x4x8x8xf32>
    %63 = tpu.transpose %62, [0, 2, 1, 3] : vector<1x4x8x8xf32> -> vector<1x8x4x8xf32>
    %64 = vector.shape_cast %63 : vector<1x8x4x8xf32> to vector<8x32xf32>
    %65 = arith.truncf %64 : vector<8x32xf32> to vector<8x32xbf16>
    %c0_20 = arith.constant 0 : index
    %c0_21 = arith.constant 0 : index
    %66 = vector.load %arg6[%c0_20, %c0_21] : memref<32x32xbf16, #tpu.memory_space<vmem>>, vector<32x32xbf16>
    %cst_22 = arith.constant dense<0.000000e+00> : vector<8x32xf32>
    %67 = tpu.matmul %65, %66, %cst_22 {dimension_numbers = #tpu.dot_dimension_numbers<[1], [0], [0], [1], [0, 0, 1, 1], [], []>} : vector<8x32xbf16>, vector<32x32xbf16>, vector<8x32xf32> -> vector<8x32xf32>
    %c0_23 = arith.constant 0 : index
    %c0_24 = arith.constant 0 : index
    %68 = vector.load %arg7[%c0_23, %c0_24] : memref<1x32xf32, #tpu.memory_space<vmem>>, vector<1x32xf32>
    %69 = vector.broadcast %68 : vector<1x32xf32> to vector<8x32xf32>
    %70 = arith.addf %67, %69 : vector<8x32xf32>
    %71 = arith.addf %1, %70 : vector<8x32xf32>
    %c0_25 = arith.constant 0 : index
    %c0_26 = arith.constant 0 : index
    %72 = vector.load %arg8[%c0_25, %c0_26] : memref<1x32xf32, #tpu.memory_space<vmem>>, vector<1x32xf32>
    %c0_27 = arith.constant 0 : index
    %c0_28 = arith.constant 0 : index
    %73 = vector.load %arg9[%c0_27, %c0_28] : memref<1x32xf32, #tpu.memory_space<vmem>>, vector<1x32xf32>
    %cst_29 = arith.constant dense<0.000000e+00> : vector<8xf32>
    %74 = vector.multi_reduction <add>, %71, %cst_29 [1] : vector<8x32xf32> to vector<8xf32>
    %75 = vector.shape_cast %74 : vector<8xf32> to vector<8x1xf32>
    %cst_30 = arith.constant 3.200000e+01 : f32
    %76 = vector.broadcast %cst_30 : f32 to vector<8x1xf32>
    %77 = arith.divf %75, %76 : vector<8x1xf32>
    %78 = vector.broadcast %77 : vector<8x1xf32> to vector<8x32xf32>
    %79 = arith.subf %71, %78 : vector<8x32xf32>
    %80 = arith.mulf %79, %79 : vector<8x32xf32>
    %cst_31 = arith.constant dense<0.000000e+00> : vector<8xf32>
    %81 = vector.multi_reduction <add>, %80, %cst_31 [1] : vector<8x32xf32> to vector<8xf32>
    %82 = vector.shape_cast %81 : vector<8xf32> to vector<8x1xf32>
    %cst_32 = arith.constant 3.200000e+01 : f32
    %83 = vector.broadcast %cst_32 : f32 to vector<8x1xf32>
    %84 = arith.divf %82, %83 : vector<8x1xf32>
    %85 = vector.broadcast %77 : vector<8x1xf32> to vector<8x32xf32>
    %86 = arith.subf %71, %85 : vector<8x32xf32>
    %cst_33 = arith.constant 9.99999974E-6 : f32
    %87 = vector.broadcast %cst_33 : f32 to vector<8x1xf32>
    %88 = arith.addf %84, %87 : vector<8x1xf32>
    %89 = math.rsqrt %88 : vector<8x1xf32>
    %90 = vector.broadcast %89 : vector<8x1xf32> to vector<8x32xf32>
    %91 = arith.mulf %86, %90 : vector<8x32xf32>
    %92 = vector.broadcast %72 : vector<1x32xf32> to vector<8x32xf32>
    %93 = arith.mulf %91, %92 : vector<8x32xf32>
    %94 = vector.broadcast %73 : vector<1x32xf32> to vector<8x32xf32>
    %95 = arith.addf %93, %94 : vector<8x32xf32>
    %96 = arith.truncf %95 : vector<8x32xf32> to vector<8x32xbf16>
    %c0_34 = arith.constant 0 : index
    %c0_35 = arith.constant 0 : index
    %97 = vector.load %arg10[%c0_34, %c0_35] : memref<32x128xbf16, #tpu.memory_space<vmem>>, vector<32x128xbf16>
    %cst_36 = arith.constant dense<0.000000e+00> : vector<8x128xf32>
    %98 = tpu.matmul %96, %97, %cst_36 {dimension_numbers = #tpu.dot_dimension_numbers<[1], [0], [0], [1], [0, 0, 1, 1], [], []>} : vector<8x32xbf16>, vector<32x128xbf16>, vector<8x128xf32> -> vector<8x128xf32>
    %c0_37 = arith.constant 0 : index
    %c0_38 = arith.constant 0 : index
    %99 = vector.load %arg11[%c0_37, %c0_38] : memref<1x128xf32, #tpu.memory_space<vmem>>, vector<1x128xf32>
    %100 = vector.broadcast %99 : vector<1x128xf32> to vector<8x128xf32>
    %101 = arith.addf %98, %100 : vector<8x128xf32>
    %cst_39 = arith.constant 1.702000e+00 : f32
    %102 = vector.broadcast %cst_39 : f32 to vector<8x128xf32>
    %103 = arith.mulf %102, %101 : vector<8x128xf32>
    %104 = arith.negf %103 : vector<8x128xf32>
    %105 = math.exp %104 : vector<8x128xf32>
    %cst_40 = arith.constant 1.000000e+00 : f32
    %106 = vector.broadcast %cst_40 : f32 to vector<8x128xf32>
    %107 = arith.addf %106, %105 : vector<8x128xf32>
    %108 = arith.divf %106, %107 : vector<8x128xf32>
    %109 = arith.mulf %101, %108 : vector<8x128xf32>
    %110 = arith.truncf %109 : vector<8x128xf32> to vector<8x128xbf16>
    %c0_41 = arith.constant 0 : index
    %c0_42 = arith.constant 0 : index
    %111 = vector.load %arg12[%c0_41, %c0_42] : memref<128x32xbf16, #tpu.memory_space<vmem>>, vector<128x32xbf16>
    %cst_43 = arith.constant dense<0.000000e+00> : vector<8x32xf32>
    %112 = tpu.matmul %110, %111, %cst_43 {dimension_numbers = #tpu.dot_dimension_numbers<[1], [0], [0], [1], [0, 0, 1, 1], [], []>} : vector<8x128xbf16>, vector<128x32xbf16>, vector<8x32xf32> -> vector<8x32xf32>
    %c0_44 = arith.constant 0 : index
    %c0_45 = arith.constant 0 : index
    %113 = vector.load %arg13[%c0_44, %c0_45] : memref<1x32xf32, #tpu.memory_space<vmem>>, vector<1x32xf32>
    %114 = vector.broadcast %113 : vector<1x32xf32> to vector<8x32xf32>
    %115 = arith.addf %112, %114 : vector<8x32xf32>
    %116 = arith.addf %71, %115 : vector<8x32xf32>
    %117 = vector.shape_cast %116 : vector<8x32xf32> to vector<1x8x32xf32>
    %c0_46 = arith.constant 0 : index
    %c0_47 = arith.constant 0 : index
    %c0_48 = arith.constant 0 : index
    %118 = vector.load %arg14[%c0_46, %c0_47, %c0_48] : memref<1x8x32xf32, #tpu.memory_space<vmem>>, vector<1x8x32xf32>
    tpu.vector_store %arg14[%c0_46, %c0_47, %c0_48], %117 {strides = array<i32>} : memref<1x8x32xf32, #tpu.memory_space<vmem>>, vector<1x8x32xf32>,
    return
  }
  func.func @transform_0(%arg0: i32) -> (i32, i32, i32) {
    %c0_i32 = arith.constant 0 : i32
    %c0_i32_0 = arith.constant 0 : i32
    %c0_i32_1 = arith.constant 0 : i32
    return %arg0, %c0_i32, %c0_i32_0 : i32, i32, i32
  }
  func.func @transform_1(%arg0: i32) -> (i32, i32) {
    %c0_i32 = arith.constant 0 : i32
    %c0_i32_0 = arith.constant 0 : i32
    %c0_i32_1 = arith.constant 0 : i32
    return %c0_i32, %c0_i32_0 : i32, i32
  }
  func.func @transform_2(%arg0: i32) -> (i32, i32) {
    %c0_i32 = arith.constant 0 : i32
    %c0_i32_0 = arith.constant 0 : i32
    %c0_i32_1 = arith.constant 0 : i32
    return %c0_i32, %c0_i32_0 : i32, i32
  }
  func.func @transform_3(%arg0: i32) -> (i32, i32) {
    %c0_i32 = arith.constant 0 : i32
    %c0_i32_0 = arith.constant 0 : i32
    %c0_i32_1 = arith.constant 0 : i32
    return %c0_i32, %c0_i32_0 : i32, i32
  }
  func.func @transform_4(%arg0: i32) -> (i32, i32) {
    %c0_i32 = arith.constant 0 : i32
    %c0_i32_0 = arith.constant 0 : i32
    %c0_i32_1 = arith.constant 0 : i32
    return %c0_i32, %c0_i32_0 : i32, i32
  }
  func.func @transform_5(%arg0: i32) -> (i32, i32) {
    %c0_i32 = arith.constant 0 : i32
    %c0_i32_0 = arith.constant 0 : i32
    %c0_i32_1 = arith.constant 0 : i32
    return %c0_i32, %c0_i32_0 : i32, i32
  }
  func.func @transform_6(%arg0: i32) -> (i32, i32) {
    %c0_i32 = arith.constant 0 : i32
    %c0_i32_0 = arith.constant 0 : i32
    %c0_i32_1 = arith.constant 0 : i32
    return %c0_i32, %c0_i32_0 : i32, i32
  }
  func.func @transform_7(%arg0: i32) -> (i32, i32) {
    %c0_i32 = arith.constant 0 : i32
    %c0_i32_0 = arith.constant 0 : i32
    %c0_i32_1 = arith.constant 0 : i32
    return %c0_i32, %c0_i32_0 : i32, i32
  }
  func.func @transform_8(%arg0: i32) -> (i32, i32) {
    %c0_i32 = arith.constant 0 : i32
    %c0_i32_0 = arith.constant 0 : i32
    %c0_i32_1 = arith.constant 0 : i32
    return %c0_i32, %c0_i32_0 : i32, i32
  }
  func.func @transform_9(%arg0: i32) -> (i32, i32) {
    %c0_i32 = arith.constant 0 : i32
    %c0_i32_0 = arith.constant 0 : i32
    %c0_i32_1 = arith.constant 0 : i32
    return %c0_i32, %c0_i32_0 : i32, i32
  }
  func.func @transform_10(%arg0: i32) -> (i32, i32) {
    %c0_i32 = arith.constant 0 : i32
    %c0_i32_0 = arith.constant 0 : i32
    %c0_i32_1 = arith.constant 0 : i32
    return %c0_i32, %c0_i32_0 : i32, i32
  }
  func.func @transform_11(%arg0: i32) -> (i32, i32) {
    %c0_i32 = arith.constant 0 : i32
    %c0_i32_0 = arith.constant 0 : i32
    %c0_i32_1 = arith.constant 0 : i32
    return %c0_i32, %c0_i32_0 : i32, i32
  }
  func.func @transform_12(%arg0: i32) -> (i32, i32) {
    %c0_i32 = arith.constant 0 : i32
    %c0_i32_0 = arith.constant 0 : i32
    %c0_i32_1 = arith.constant 0 : i32
    return %c0_i32, %c0_i32_0 : i32, i32
  }
  func.func @transform_13(%arg0: i32) -> (i32, i32, i32) {
    %c0_i32 = arith.constant 0 : i32
    %c0_i32_0 = arith.constant 0 : i32
    %c0_i32_1 = arith.constant 0 : i32
    return %arg0, %c0_i32, %c0_i32_0 : i32, i32, i32
  }
}

</mosaic_0001>

<bundles_post_ra>
// kernel: tpu_custom_call.1
= control target key start
LH: loop header
LB: loop body
LE: loop exit
PB: predicated region body
PF: predicated region fallthrough
CT: control target
= control target key end

     0   :  { %s2183_s0 = inlined_call_operand.vmem [shape: f32[2,8,32], index: 0, kind: input, shape index: {}]   ;;  %s2184_s1 = inlined_call_operand.vmem [shape: f32[1,32], index: 1, kind: input, shape index: {}]   ;;  %s2185_s2 = inlined_call_operand.vmem [shape: f32[1,32], index: 2, kind: input, shape index: {}]   ;;  %s2186_s3 = inlined_call_operand.vmem [shape: bf16[32,96], index: 3, kind: input, shape index: {}]   ;;  %s2187_s4 = inlined_call_operand.vmem [shape: f32[1,96], index: 4, kind: input, shape index: {}]   ;;  %s2188_s5 = inlined_call_operand.vmem [shape: bf16[32,32], index: 5, kind: input, shape index: {}]   ;;  %s2189_s6 = inlined_call_operand.vmem [shape: f32[1,32], index: 6, kind: input, shape index: {}]   ;;  %s2190_s7 = inlined_call_operand.vmem [shape: f32[1,32], index: 7, kind: input, shape index: {}]   ;;  %s2191_s8 = inlined_call_operand.vmem [shape: f32[1,32], index: 8, kind: input, shape index: {}]   ;;  %s2192_s9 = inlined_call_operand.vmem [shape: bf16[32,128], index: 9, kind: input, shape index: {}]   ;;  %s2193_s10 = inlined_call_operand.vmem [shape: f32[1,128], index: 10, kind: input, shape index: {}]   ;;  %s2194_s11 = inlined_call_operand.vmem [shape: bf16[128,32], index: 11, kind: input, shape index: {}]   ;;  %s2195_s12 = inlined_call_operand.vmem [shape: f32[1,32], index: 12, kind: input, shape index: {}]   ;;  %s2196_s13 = inlined_call_operand.hbm [shape: f32[2,8,32], index: 13, kind: output, shape index: {}]  }
   0x1   :  { %2197 = sst [smem:[#allocation5_spill]] %s2183_s0 }
   0x2   :  { %2198 = sst [smem:[#allocation6_spill]] %s2184_s1 }
   0x3   :  { %2199 = sst [smem:[#allocation7_spill]] %s2185_s2 }
   0x4   :  { %2200 = sst [smem:[#allocation8_spill]] %s2186_s3 }
   0x5   :  { %18 = vsyncpa [#allocation3], 0 }
   0x6   :  { %20 = vsyncpa [#allocation3 + $0x1], 0  ;;  %s1829_s25 = smov 0   ;;  %s1831_s26 = smov 0  }
   0x7   :  { %s1833_s27 = smov 0   ;;  %s1835_s28 = smov 0  }
   0x8 LB: > { %s1850_s29 = sadd.s32 4294967295, %s1746_s28   ;;  %s1508_s30 = sadd.s32 4294967294, %s1746_s28   ;;  %s1746_s28 = sphi %s1835_s28, %s2210_s28   ;;  %s1742_s27 = sphi %s1833_s27, %s2209_s27   ;;  %s1738_s26 = sphi %s1831_s26, %s2208_s26   ;;  %s1734_s25 = sphi %s1829_s25, %s2207_s25  }
   0x9   : > { %s1854_s14 = sadd.s32 1, %s1746_s28   ;;  %s311_s15 = sadd.s32 1, %s1742_s27 }
   0xa   : > { %s308_s16 = ssub.s32 %s1746_s28, %s1854_s14  ;;  %p321_p0 = scmp.ne.s32.totalorder %s1742_s27, %s1738_s26 }
   0xb   : > { %p309_p1 = scmp.eq.s32.totalorder %s308_s16, 0  ;;  %p322_p2 = scmp.eq.s32.totalorder %s1850_s29, 1 }
   0xc   : > { %p327_p3 = scmp.ne.s32.totalorder %s1738_s26, %s1734_s25  ;;  %p328_p4 = scmp.eq.s32.totalorder %s1508_s30, 1 }
   0xd   : > { %s1865_s17 = scalar_select %p309_p1, %s1742_s27, %s311_s15  }
   0xe   : > { %p1867_p5 = por %p322_p2, %p321_p0  ;;  %p1871_p6 = por %p328_p4, %p327_p3 }
   0xf   : > { %p1511_p7 = scmp.ge.s32.totalorder %s1746_s28, 1  ;;  %p389_p8 = scmp.lt.s32.totalorder %s1746_s28, 3 }
  0x11   : > { %p390_p9 = pnand %p1511_p7, %p389_p8 }
  0x12   : > { %p432_p10 = scmp.lt.s32.totalorder (!%p390_p9), %s1850_s29, 1  ;;  %s2203_s0 = sld [smem:[#allocation5_spill]] (!%p390_p9) }
  0x13   : > { %393 = sbr.rel (%p390_p9) target bundleno = 1961 (0x7a9), region = 72  ;;  %s2204_s3 = sld [smem:[#allocation8_spill]] (!%p390_p9) }
  0x14   : > { %s2205_s1 = sld [smem:[#allocation6_spill]] (!%p390_p9)  ;;  %s1749_s16 = smov (!%p390_p9), 104  }
  0x15   : > { %s2206_s2 = sld [smem:[#allocation7_spill]] (!%p390_p9)  ;;  %s1752_s22 = smov (!%p390_p9), 112  }
  0x16   : > { %s1753_s23 = smov (!%p390_p9), 64   ;;  %s1757_s30 = smov (!%p390_p9), 24  }
  0x17   : > { %s1758_s15 = smov (!%p390_p9), 8  }
  0x18   : > { %s433_s20 = scalar_select %p432_p10, %s1850_s29, 1  ;;  %vm440_vm0 = vcmask 261120   ;;  %v1748_v2 = vmov 32.0   ;;  %v1652_v32 = vld [vmem:[%s2187_s4] ss:$0 sm:$0xff]  ;;  %vm547_vm5 = vcmask 1047556  }
  0x19   : > { %1658 = vrcp.f32 %v1748_v2  ;;  %v1587_v14 = vld [vmem:[%s2204_s3 + $0x8] sm:$0xff]  ;;  %v1586_v15 = vld [vmem:[%s2204_s3] sm:$0xff]  ;;  %v1754_v46 = vmov 1983009808   ;;  %v1755_v59 = vmov 1934713408  }
  0x1a   : > { %s1513_s21 = sshll.u32 %s433_s20, 3  ;;  %508 = vmatpush.bf16.msra.mxu0 %v1587_v14  ;;  %v1650_v25 = vld [vmem:[%s2205_s1] ss:$0 sm:$0xff]  ;;  %s1750_s20 = smov 120   ;;  %v538_v47 = vunpack.c.l.s4 %v1754_v46  ;;  %v552_v60 = vunpack.c.l.s4 %v1755_v59  ;;  %vm891_vm6 = vcmask 64512   ;;  %vm1011_vm7 = vcmask 1043456  }
  0x1b   : > { %s435_s24 = scalar_lea.vmem %s2203_s0, %s1513_s21  ;;  %v1651_v28 = vld [vmem:[%s2206_s2] ss:$0 sm:$0xff]  ;;  %s1751_s21 = smov 96   ;;  %vm1217_vm8 = vcmask 130048   ;;  %vm1219_vm9 = vcmask 195584  }
  0x1c   : > { %v1882_v0 = vld [vmem:[%s435_s24] sm:$0xff]  ;;  %v1910_v54 = vunpack.c.0.s8 %v538_v47  ;;  %s1756_s24 = smov 16   ;;  %s429_s1 = sand.u32 1, %s1738_s26  }
  0x1d   : > { %v441_v1 = vsel %vm440_vm0, %v1882_v0, 0.0 }
  0x1e   : > { %442 = vadd.xlane.f32.xlu0 %v441_v1  ;;  %509 = vmatpush.bf16.msra.mxu0 %v1586_v15 }
  0x1f   : > { %v1659_v3 = vpop.eup %1658 }
  0x20   : > { %v445_v4 = vmul.f32 32.0, %v1659_v3  ;;  %vm449_vm1 = vweird.f32 %v1659_v3 }
  0x22   : > { %v446_v5 = vsub.f32 1.0, %v445_v4 }
  0x24   : > { %v447_v6 = vmul.f32 %v1659_v3, %v446_v5 }
  0x26   : > { %v448_v7 = vadd.f32 %v1659_v3, %v447_v6 }
  0x28   : > { %v1886_v8 = vsel %vm449_vm1, %v1659_v3, %v448_v7 }
  0x91   : > { %v443_v9 = vpop.xlane.xlu0 %442 }
  0x92   : > { %v451_v10 = vmul.f32 %v1886_v8, %v443_v9 }
  0x94   : > { %v452_v11 = vsub.f32 %v1882_v0, %v451_v10  ;;  %v1920_v10 = vunpack.c.0.s8 %v552_v60 }
  0x96   : > { %v453_v12 = vmul.f32 %v452_v11, %v452_v11 }
  0x98   : > { %v454_v13 = vsel %vm440_vm0, %v453_v12, 0.0 }
  0x99   : > { %455 = vadd.xlane.f32.xlu0 %v454_v13 }
 0x10c   : > { %v456_v16 = vpop.xlane.xlu0 %455 }
 0x10d   : > { %v457_v17 = vmul.f32 %v456_v16, %v1886_v8 }
 0x10f   : > { %v458_v18 = vadd.f32 1e-05, %v457_v17 }
 0x111   : > { %1660 = vrsqrt.f32 %v458_v18  ;;  %vm465_vm3 = vweird.f32 %v458_v18 }
 0x117   : > { %v1661_v19 = vpop.eup %1660 }
 0x118   : > { %v460_v20 = vmul.f32 %v1661_v19, %v458_v18  ;;  %vm466_vm2 = vweird.f32 %v1661_v19 }
 0x119   : > { %vm467_vm4 = vmor %vm465_vm3, %vm466_vm2 }
 0x11a   : > { %v461_v21 = vmul.f32 %v1661_v19, %v460_v20 }
 0x11c   : > { %v462_v22 = vmul.f32 0.5, %v461_v21 }
 0x11e   : > { %v463_v23 = vsub.f32 1.5, %v462_v22 }
 0x120   : > { %v464_v24 = vmul.f32 %v1661_v19, %v463_v23 }
 0x122   : > { %v468_v26 = vsel %vm467_vm4, %v1661_v19, %v464_v24 }
 0x123   : > { %v469_v27 = vmul.f32 %v468_v26, %v452_v11 }
 0x125   : > { %v473_v29 = vmul.f32 %v1650_v25, %v469_v27 }
 0x127   : > { %v477_v30 = vadd.f32 %v1651_v28, %v473_v29 }
 0x129   : > { %v478_v31 = vpack.c.bf16 %v477_v30, %v477_v30 }
 0x12b   : > { %1522 = vmatmul.msk.bf16.vlgmr.msra.gmra.mxu0 %vm440_vm0, %v478_v31 }
 0x1a8   : > { %v511_v33 = vpop.f32.mrf.mxu0 }
 0x1a9   : > { %v512_v34 = vadd.f32 %v1652_v32, %v511_v33 }
 0x1ab   : > { %v639_v35 = vpack.c.bf16 %v512_v34, %v512_v34  ;;  %v515_v37 = vmul.f32 0.35355338, %v512_v34 }
 0x1ad   : > { %645 = vrot.lane.b32.xlu2 %v639_v35, %s1749_s16  ;;  %641 = vrot.lane.b32.xlu1 %v639_v35, %s1750_s20  ;;  %v516_v38 = vpack.c.bf16 %v515_v37, %v515_v37 }
 0x1af   : > { %v527_v50 = vshrl.u32 %v516_v38, 16 }
 0x1b0   : > { %v513_v36 = vpop.f32.mrf.mxu0 }
 0x1b5   : > { %647 = vrot.lane.b32.xlu2 %v639_v35, %s1751_s21  ;;  %643 = vrot.lane.b32.xlu1 %v639_v35, %s1752_s22 }
 0x1bd   : > { %518 = vrot.lane.b32.xlu1 %v516_v38, %s1750_s20 }
 0x207   : > { %v646_v39 = vpop.permute.xlu2 %645 }
 0x208   : > { %653 = vrot.lane.b32.xlu2 %v646_v39, %s1751_s21 }
 0x20f   : > { %v648_v42 = vpop.permute.xlu2 %647 }
 0x210   : > { %520 = vrot.lane.b32.xlu2 %v516_v38, %s1752_s22  ;;  %v658_v53 = vshrl.u32 %v648_v42, 16 }
 0x218   : > { %769 = vrot.lane.b32.xlu2 %v639_v35, %s1753_s23 }
 0x21f   : > { %v642_v40 = vpop.permute.xlu1 %641 }
 0x220   : > { %649 = vrot.lane.b32.xlu0 %v642_v40, %s1751_s21  ;;  %775 = vrot.lane.b32.xlu2 %v646_v39, %s1753_s23 }
 0x227   : > { %v644_v41 = vpop.permute.xlu1 %643 }
 0x228   : > { %771 = vrot.lane.b32.xlu0 %v642_v40, %s1753_s23  ;;  %651 = vrot.lane.b32.xlu1 %v644_v41, %s1751_s21 }
 0x22f   : > { %v519_v45 = vpop.permute.xlu1 %518 }
 0x230   : > { %522 = vrot.lane.b32.xlu1 %v516_v38, %s1749_s16  ;;  %v528_v48 = vshrl.u32 %v519_v45, 16  ;;  %v526_v55 = vpack.i.b16 %v519_v45, %v516_v38 }
 0x232   : > { %v529_v56 = vpack.i.b16 %v528_v48, %v527_v50  ;;  %v1914_v62 = vperm.slane %v526_v55, %v1910_v54 }
 0x234   : > { %v1917_v63 = vperm.slane %v529_v56, %v1910_v54  ;;  %v549_v18 = vrot.slane %v1914_v62, 4 }
 0x236   : > { %v575_v22 = vrot.slane %v1917_v63, 4 }
 0x238   : > { %773 = vrot.lane.b32.xlu1 %v644_v41, %s1753_s23 }
 0x262   : > { %v654_v43 = vpop.permute.xlu2 %653 }
 0x263   : > { %v665_v3 = vshrl.u32 %v654_v43, 16 }
 0x26a   : > { %v1908_v44 = vpop.permute.xlu2 %520 }
 0x26b   : > { %v533_v23 = vshrl.u32 %v1908_v44, 16 }
 0x272   : > { %v770_v57 = vpop.permute.xlu2 %769 }
 0x273   : > { %v780_v7 = vshrl.u32 %v770_v57, 16 }
 0x27a   : > { %v776_v24 = vpop.permute.xlu2 %775 }
 0x27b   : > { %v787_v36 = vshrl.u32 %v776_v24, 16 }
 0x292   : > { %v650_v49 = vpop.permute.xlu0 %649 }
 0x293   : > { %v659_v51 = vshrl.u32 %v650_v49, 16  ;;  %v657_v52 = vpack.i.b16 %v650_v49, %v648_v42 }
 0x295   : > { %v660_v58 = vpack.i.b16 %v659_v51, %v658_v53  ;;  %v671_v61 = vperm.slane %v657_v52, %v1910_v54 }
 0x297   : > { %v697_v9 = vperm.slane %v660_v58, %v1910_v54  ;;  %v679_v11 = vrot.slane %v671_v61, 4 }
 0x299   : > { %v705_v19 = vrot.slane %v697_v9, 4 }
 0x29a   : > { %v772_v1 = vpop.permute.xlu0 %771  ;;  %v652_v2 = vpop.permute.xlu1 %651 }
 0x29b   : > { %v781_v4 = vshrl.u32 %v772_v1, 16  ;;  %v663_v5 = vpack.i.b16 %v654_v43, %v652_v2  ;;  %v664_v6 = vshrl.u32 %v652_v2, 16  ;;  %v779_v12 = vpack.i.b16 %v772_v1, %v770_v57 }
 0x29d   : > { %v666_v13 = vpack.i.b16 %v665_v3, %v664_v6  ;;  %v676_v14 = vperm.slane %v663_v5, %v1910_v54  ;;  %v782_v15 = vpack.i.b16 %v781_v4, %v780_v7  ;;  %v1930_v25 = vperm.slane %v779_v12, %v1910_v54 }
 0x29f   : > { %v677_v16 = vrot.slane %v676_v14, 4  ;;  %v680_v17 = vsel %vm547_vm5, %v676_v14, %v679_v11  ;;  %v702_v21 = vperm.slane %v666_v13, %v1910_v54  ;;  %v1936_v32 = vperm.slane %v782_v15, %v1910_v54 }
 0x2a0   : > { %v688_v20 = vperm.slane %v680_v17, %v1920_v10  ;;  %v801_v45 = vrot.slane %v1930_v25, 4 }
 0x2a1   : > { %v678_v26 = vsel %vm547_vm5, %v677_v16, %v671_v61  ;;  %v703_v29 = vrot.slane %v702_v21, 4  ;;  %v706_v30 = vsel %vm547_vm5, %v702_v21, %v705_v19  ;;  %v827_v48 = vrot.slane %v1936_v32, 4 }
 0x2a2   : > { %v684_v27 = vperm.slane %v678_v26, %v1920_v10  ;;  %v691_v28 = vrot.slane %v688_v20, 4  ;;  %v523_v31 = vpop.permute.xlu1 %522  ;;  %v714_v33 = vperm.slane %v706_v30, %v1920_v10 }
 0x2a3   : > { %v532_v34 = vpack.i.b16 %v523_v31, %v1908_v44  ;;  %v534_v35 = vshrl.u32 %v523_v31, 16  ;;  %v704_v39 = vsel %vm547_vm5, %v703_v29, %v697_v9 }
 0x2a4   : > { %v689_v37 = vrot.slane %v684_v27, 4  ;;  %v692_v38 = vsel %vm547_vm5, 0, %v691_v28  ;;  %v710_v40 = vperm.slane %v704_v39, %v1920_v10  ;;  %v717_v41 = vrot.slane %v714_v33, 4 }
 0x2a5   : > { %v724_v42 = vrot.slane %v692_v38, 4  ;;  %v535_v43 = vpack.i.b16 %v534_v35, %v533_v23  ;;  %v545_v47 = vperm.slane %v532_v34, %v1910_v54  ;;  %v719_v44 = vsel %vm547_vm5, %v691_v28, %v684_v27 }
 0x2a6   : > { %v690_v46 = vsel %vm547_vm5, 0, %v689_v37  ;;  %v718_v49 = vsel %vm547_vm5, 0, %v717_v41  ;;  %v715_v52 = vrot.slane %v710_v40, 4  ;;  %v723_v60 = vperm.slane %v719_v44, %v1910_v54 }
 0x2a7   : > { %v572_v50 = vperm.slane %v535_v43, %v1910_v54  ;;  %v725_v51 = vsel %vm547_vm5, %v724_v42, %v690_v46  ;;  %v546_v53 = vrot.slane %v545_v47, 4  ;;  %v550_v55 = vsel %vm547_vm5, %v545_v47, %v549_v18 }
 0x2a8   : > { %v729_v56 = vperm.slane %v725_v51, %v1910_v54  ;;  %v558_v57 = vperm.slane %v550_v55, %v1920_v10  ;;  %v743_v61 = vrot.slane %v718_v49, 4  ;;  %v716_v14 = vsel %vm547_vm5, 0, %v715_v52 }
 0x2a9   : > { %v573_v58 = vrot.slane %v572_v50, 4  ;;  %v576_v59 = vsel %vm547_vm5, %v572_v50, %v575_v22  ;;  %v548_v1 = vsel %vm547_vm5, %v546_v53, %v1914_v62 }
 0x2aa   : > { %v584_v2 = vperm.slane %v576_v59, %v1920_v10  ;;  %v774_v3 = vpop.permute.xlu1 %773  ;;  %v730_v4 = vrot.slane %v729_v56, 4  ;;  %v554_v5 = vperm.slane %v548_v1, %v1920_v10  ;;  %v561_v6 = vrot.slane %v558_v57, 4 }
 0x2ab   : > { %v574_v7 = vsel %vm547_vm5, %v573_v58, %v1917_v63  ;;  %v785_v9 = vpack.i.b16 %v776_v24, %v774_v3  ;;  %v786_v13 = vshrl.u32 %v774_v3, 16  ;;  %v738_v63 = vsel %vm547_vm5, %v717_v41, %v710_v40 }
 0x2ac   : > { %v580_v11 = vperm.slane %v574_v7, %v1920_v10  ;;  %v587_v12 = vrot.slane %v584_v2, 4  ;;  %v559_v15 = vrot.slane %v554_v5, 4  ;;  %v562_v62 = vsel %vm547_vm5, 0, %v561_v6 }
 0x2ad   : > { %v798_v16 = vperm.slane %v785_v9, %v1910_v54  ;;  %v731_v17 = vsel %vm547_vm5, %v730_v4, %v723_v60  ;;  %v788_v20 = vpack.i.b16 %v787_v36, %v786_v13  ;;  %v589_v21 = vsel %vm547_vm5, %v561_v6, %v554_v5 }
 0x2ae   : > { %v585_v18 = vrot.slane %v580_v11, 4  ;;  %v588_v19 = vsel %vm547_vm5, 0, %v587_v12  ;;  %v594_v22 = vrot.slane %v562_v62, 4  ;;  %v560_v26 = vsel %vm547_vm5, 0, %v559_v15 }
 0x2af   : > { %v799_v23 = vrot.slane %v798_v16, 4  ;;  %v802_v24 = vsel %vm547_vm5, %v798_v16, %v801_v45  ;;  %v824_v28 = vperm.slane %v788_v20, %v1910_v54  ;;  %v735_v29 = vperm.slane %v731_v17, %v1920_v10 }
 0x2b0   : > { %v810_v27 = vperm.slane %v802_v24, %v1920_v10  ;;  %v586_v30 = vsel %vm547_vm5, 0, %v585_v18  ;;  %v613_v31 = vrot.slane %v588_v19, 4  ;;  %v744_v34 = vsel %vm547_vm5, %v743_v61, %v716_v14 }
 0x2b1   : > { %v800_v33 = vsel %vm547_vm5, %v799_v23, %v1930_v25  ;;  %v825_v37 = vrot.slane %v824_v28, 4  ;;  %v828_v38 = vsel %vm547_vm5, %v824_v28, %v827_v48  ;;  %v742_v40 = vperm.slane %v738_v63, %v1910_v54 }
 0x2b2   : > { %v806_v35 = vperm.slane %v800_v33, %v1920_v10  ;;  %v813_v36 = vrot.slane %v810_v27, 4  ;;  %v836_v39 = vperm.slane %v828_v38, %v1920_v10  ;;  %v748_v41 = vperm.slane %v744_v34, %v1910_v54 }
 0x2b3   : > { %v736_v42 = vrot.slane %v735_v29, 4  ;;  %v826_v25 = vsel %vm547_vm5, %v825_v37, %v1936_v32  ;;  %v595_v46 = vsel %vm547_vm5, %v594_v22, %v560_v26  ;;  %v593_v52 = vperm.slane %v589_v21, %v1910_v54 }
 0x2b4   : > { %v811_v43 = vrot.slane %v806_v35, 4  ;;  %v814_v45 = vsel %vm547_vm5, 0, %v813_v36  ;;  %v832_v47 = vperm.slane %v826_v25, %v1920_v10  ;;  %v839_v44 = vrot.slane %v836_v39, 4 }
 0x2b5   : > { %v846_v49 = vrot.slane %v814_v45, 4  ;;  %v749_v48 = vrot.slane %v748_v41, 4  ;;  %v737_v51 = vsel %vm547_vm5, 0, %v736_v42  ;;  %v599_v53 = vperm.slane %v595_v46, %v1910_v54 }
 0x2b6   : > { %v812_v50 = vsel %vm547_vm5, 0, %v811_v43  ;;  %v840_v55 = vsel %vm547_vm5, 0, %v839_v44  ;;  %v760_v32 = vshrl.u32 %v735_v29, 16  ;;  %v608_v57 = vsel %vm547_vm5, %v587_v12, %v580_v11 }
 0x2b7   : > { %v750_v56 = vsel %vm547_vm5, %v749_v48, %v742_v40  ;;  %v837_v58 = vrot.slane %v832_v47, 4  ;;  %v766_v60 = vshrl.u32 %v737_v51, 16  ;;  %v600_v61 = vrot.slane %v599_v53, 4 }
 0x2b8   : > { %v754_v59 = vperm.slane %v750_v56, %v1920_v10  ;;  %v865_v1 = vrot.slane %v840_v55, 4  ;;  %v614_v2 = vsel %vm547_vm5, %v613_v31, %v586_v30  ;;  %v841_v3 = vsel %vm547_vm5, %v813_v36, %v806_v35 }
 0x2b9   : > { %v847_v4 = vsel %vm547_vm5, %v846_v49, %v812_v50  ;;  %v601_v9 = vsel %vm547_vm5, %v600_v61, %v593_v52  ;;  %v612_v11 = vperm.slane %v608_v57, %v1910_v54  ;;  %v618_v12 = vperm.slane %v614_v2, %v1910_v54 }
 0x2ba   : > { %v759_v5 = vpack.i.b16 %v754_v59, %v735_v29  ;;  %v761_v6 = vshrl.u32 %v754_v59, 16  ;;  %v755_v7 = vrot.slane %v754_v59, 4  ;;  %v605_v13 = vperm.slane %v601_v9, %v1920_v10 }
 0x2bb   : > { %v851_v14 = vperm.slane %v847_v4, %v1910_v54  ;;  %v838_v17 = vsel %vm547_vm5, 0, %v837_v58  ;;  %v619_v20 = vrot.slane %v618_v12, 4  ;;  %v845_v63 = vperm.slane %v841_v3, %v1910_v54 }
 0x2bc   : > { %v896_v15 = vsel %vm891_vm6, %v759_v5, 0  ;;  %v762_v62 = vpack.i.b16 %v761_v6, %v760_v32  ;;  %v756_v16 = vsel %vm547_vm5, 0, %v755_v7  ;;  %v606_v22 = vrot.slane %v605_v13, 4 }
 0x2bd   : > { %905 = vmatpush.bf16.xpose.msra.mxu1 %v896_v15  ;;  %v765_v18 = vpack.i.b16 %v756_v16, %v737_v51  ;;  %v767_v19 = vshrl.u32 %v756_v16, 16  ;;  %v852_v23 = vrot.slane %v851_v14, 4  ;;  %v860_v24 = vsel %vm547_vm5, %v839_v44, %v832_v47 }
 0x2be   : > { %v915_v21 = vsel %vm891_vm6, %v762_v62, 0  ;;  %v620_v28 = vsel %vm547_vm5, %v619_v20, %v612_v11  ;;  %v866_v29 = vsel %vm547_vm5, %v865_v1, %v838_v17  ;;  %v630_v31 = vshrl.u32 %v605_v13, 16 }
 0x2bf   : > { %924 = vmatpush.bf16.xpose.msra.mxu2 %v915_v21  ;;  %v934_v26 = vsel %vm891_vm6, %v765_v18, 0  ;;  %v768_v27 = vpack.i.b16 %v767_v19, %v766_v60  ;;  %v624_v30 = vperm.slane %v620_v28, %v1920_v10  ;;  %v853_v33 = vsel %vm547_vm5, %v852_v23, %v845_v63 }
 0x2c0   : > { %943 = vmatpush.bf16.xpose.msra.mxu3 %v934_v26  ;;  %v870_v34 = vperm.slane %v866_v29, %v1910_v54  ;;  %v607_v36 = vsel %vm547_vm5, 0, %v606_v22  ;;  %v857_v37 = vperm.slane %v853_v33, %v1920_v10  ;;  %v864_v38 = vperm.slane %v860_v24, %v1910_v54 }
 0x2c1   : > { %v953_v35 = vsel %vm891_vm6, %v768_v27, 0  ;;  %v629_v39 = vpack.i.b16 %v624_v30, %v605_v13  ;;  %v631_v40 = vshrl.u32 %v624_v30, 16  ;;  %v625_v41 = vrot.slane %v624_v30, 4 }
 0x2c2   : > { %962 = vmatpush.bf16.xpose.msrb.mxu0 %v953_v35  ;;  %v871_v42 = vrot.slane %v870_v34, 4  ;;  %v858_v43 = vrot.slane %v857_v37, 4  ;;  %v636_v44 = vshrl.u32 %v607_v36, 16  ;;  %v882_v50 = vshrl.u32 %v857_v37, 16 }
 0x2c3   : > { %v632_v45 = vpack.i.b16 %v631_v40, %v630_v31  ;;  %v626_v25 = vsel %vm547_vm5, 0, %v625_v41 }
 0x2c4   : > { %1523 = vmatmul.msk.bf16.vlgmr.msra.gmra.mxu1 %vm891_vm6, %v629_v39  ;;  %v872_v46 = vsel %vm547_vm5, %v871_v42, %v864_v38  ;;  %v635_v47 = vpack.i.b16 %v626_v25, %v607_v36  ;;  %v637_v49 = vshrl.u32 %v626_v25, 16  ;;  %v859_v51 = vsel %vm547_vm5, 0, %v858_v43 }
 0x2c5   : > { %v876_v48 = vperm.slane %v872_v46, %v1920_v10  ;;  %v888_v60 = vshrl.u32 %v859_v51, 16 }
 0x2c6   : > { %1524 = vmatmul.msk.bf16.vlgmr.msra.gmra.mxu2 %vm891_vm6, %v632_v45  ;;  %v638_v52 = vpack.i.b16 %v637_v49, %v636_v44 }
 0x2c7   : > { %1525 = vmatmul.msk.bf16.vlgmr.msra.gmra.mxu3 %vm891_vm6, %v635_v47  ;;  %v881_v53 = vpack.i.b16 %v876_v48, %v857_v37  ;;  %v883_v55 = vshrl.u32 %v876_v48, 16  ;;  %v877_v56 = vrot.slane %v876_v48, 4 }
 0x2c9   : > { %1526 = vmatmul.msk.bf16.vlgmr.msrb.gmra.mxu0 %vm891_vm6, %v638_v52  ;;  %v1013_v32 = vsel %vm1011_vm7, %v881_v53, 0  ;;  %v884_v57 = vpack.i.b16 %v883_v55, %v882_v50  ;;  %v878_v58 = vsel %vm547_vm5, 0, %v877_v56 }
 0x2ca   : > { %1022 = vmatpush.bf16.msrb.mxu1 %v1013_v32  ;;  %v887_v59 = vpack.i.b16 %v878_v58, %v859_v51  ;;  %v889_v61 = vshrl.u32 %v878_v58, 16 }
 0x2cb   : > { %v1032_v1 = vsel %vm1011_vm7, %v884_v57, 0 }
 0x2cc   : > { %1041 = vmatpush.bf16.msrb.mxu2 %v1032_v1  ;;  %v1051_v2 = vsel %vm1011_vm7, %v887_v59, 0  ;;  %v890_v3 = vpack.i.b16 %v889_v61, %v888_v60 }
 0x2cd   : > { %1060 = vmatpush.bf16.msrb.mxu3 %v1051_v2 }
 0x2ce   : > { %v1070_v4 = vsel %vm1011_vm7, %v890_v3, 0 }
 0x2cf   : > { %1079 = vmatpush.bf16.msra.mxu0 %v1070_v4 }
 0x341   : > { %v907_v5 = vpop.f32.mrf.mxu1 }
 0x342   : > { %v968_v6 = vsel %vm891_vm6, %v907_v5, -inf }
 0x343   : > { %969 = vmax.xlane.f32.xlu2 %v968_v6 }
 0x346   : > { %v964_v7 = vpop.f32.mrf.mxu0 }
 0x347   : > { %v977_v17 = vsel %vm891_vm6, %v964_v7, -inf }
 0x349   : > { %v909_v9 = vpop.f32.mrf.mxu1  ;;  %v926_v13 = vpop.f32.mrf.mxu2 }
 0x34a   : > { %v945_v11 = vpop.f32.mrf.mxu3  ;;  %v971_v12 = vsel %vm891_vm6, %v926_v13, -inf }
 0x34b   : > { %972 = vmax.xlane.f32.xlu1 %v971_v12  ;;  %v974_v14 = vsel %vm891_vm6, %v945_v11, -inf }
 0x34c   : > { %975 = vmax.xlane.f32.xlu0 %v974_v14 }
 0x34e   : > { %v966_v15 = vpop.f32.mrf.mxu0 }
 0x351   : > { %v928_v62 = vpop.f32.mrf.mxu2 }
 0x352   : > { %v947_v16 = vpop.f32.mrf.mxu3 }
 0x354   : > { %978 = vmax.xlane.f32.xlu0 %v977_v17 }
 0x3b6   : > { %v970_v18 = vpop.xlane.xlu2 %969 }
 0x3b7   : > { %v980_v19 = vsub.f32 %v907_v5, %v970_v18 }
 0x3b9   : > { %v984_v20 = vmul.f32 1.442695, %v980_v19 }
 0x3bb   : > { %1662 = vpow2.f32 %v984_v20 }
 0x3be   : > { %v973_v63 = vpop.xlane.xlu1 %972 }
 0x3bf   : > { %v981_v21 = vsub.f32 %v926_v13, %v973_v63  ;;  %v976_v22 = vpop.xlane.xlu0 %975 }
 0x3c0   : > { %v982_v23 = vsub.f32 %v945_v11, %v976_v22 }
 0x3c1   : > { %v1663_v24 = vpop.eup %1662  ;;  %v986_v26 = vmul.f32 1.442695, %v981_v21 }
 0x3c2   : > { %v988_v27 = vmul.f32 1.442695, %v982_v23  ;;  %v992_v28 = vsel %vm891_vm6, %v1663_v24, 0.0  ;;  %v1004_v29 = vpack.c.bf16 %v1663_v24, %v1663_v24 }
 0x3c3   : > { %1664 = vpow2.f32 %v986_v26  ;;  %993 = vadd.xlane.f32.xlu1 %v992_v28 }
 0x3c4   : > { %1666 = vpow2.f32 %v988_v27  ;;  %1527 = vmatmul.msk.bf16.vlgmr.msrb.gmra.mxu1 %vm891_vm6, %v1004_v29 }
 0x3c7   : > { %v979_v30 = vpop.xlane.xlu0 %978 }
 0x3c8   : > { %v983_v31 = vsub.f32 %v964_v7, %v979_v30 }
 0x3c9   : > { %v1665_v33 = vpop.eup %1664 }
 0x3ca   : > { %v1667_v34 = vpop.eup %1666  ;;  %v990_v35 = vmul.f32 1.442695, %v983_v31  ;;  %v1005_v36 = vpack.c.bf16 %v1665_v33, %v1665_v33  ;;  %v995_v41 = vsel %vm891_vm6, %v1665_v33, 0.0 }
 0x3cb   : > { %v998_v37 = vsel %vm891_vm6, %v1667_v34, 0.0  ;;  %v1006_v38 = vpack.c.bf16 %v1667_v34, %v1667_v34 }
 0x3cc   : > { %1668 = vpow2.f32 %v990_v35  ;;  %1528 = vmatmul.msk.bf16.vlgmr.msrb.gmra.mxu2 %vm891_vm6, %v1005_v36  ;;  %999 = vadd.xlane.f32.xlu2 %v998_v37 }
 0x3cd   : > { %1529 = vmatmul.msk.bf16.vlgmr.msrb.gmra.mxu3 %vm891_vm6, %v1006_v38 }
 0x3d2   : > { %v1669_v39 = vpop.eup %1668 }
 0x3d3   : > { %v1007_v40 = vpack.c.bf16 %v1669_v39, %v1669_v39  ;;  %v1001_v42 = vsel %vm891_vm6, %v1669_v39, 0.0 }
 0x3d4   : > { %996 = vadd.xlane.f32.xlu2 %v995_v41  ;;  %1002 = vadd.xlane.f32.xlu0 %v1001_v42 }
 0x3d5   : > { %1530 = vmatmul.msk.bf16.vlgmr.msra.gmra.mxu0 %vm891_vm6, %v1007_v40 }
 0x436   : > { %v994_v25 = vpop.xlane.xlu1 %993 }
 0x437   : > { %1670 = vrcp.f32 %v994_v25 }
 0x43d   : > { %v1671_v49 = vpop.eup %1670 }
 0x43f   : > { %v1000_v43 = vpop.xlane.xlu2 %999 }
 0x441   : > { %v1024_v45 = vpop.f32.mrf.mxu1 }
 0x442   : > { %v1089_v48 = vmul.f32 %v1671_v49, %v1024_v45 }
 0x444   : > { %v1096_v56 = vrot.slane %v1089_v48, 4 }
 0x447   : > { %v997_v46 = vpop.xlane.xlu2 %996  ;;  %v1003_v47 = vpop.xlane.xlu0 %1002 }
 0x448   : > { %1672 = vrcp.f32 %v997_v46 }
 0x449   : > { %v1026_v44 = vpop.f32.mrf.mxu1  ;;  %1674 = vrcp.f32 %v1000_v43 }
 0x44a   : > { %1676 = vrcp.f32 %v1003_v47 }
 0x44e   : > { %v1673_v50 = vpop.eup %1672 }
 0x44f   : > { %v1043_v51 = vpop.f32.mrf.mxu2  ;;  %v1675_v52 = vpop.eup %1674 }
 0x450   : > { %v1090_v53 = vmul.f32 %v1673_v50, %v1043_v51  ;;  %v1062_v55 = vpop.f32.mrf.mxu3  ;;  %v1677_v57 = vpop.eup %1676 }
 0x451   : > { %v1091_v32 = vmul.f32 %v1675_v52, %v1062_v55 }
 0x452   : > { %v1108_v58 = vrot.slane %v1090_v53, 4  ;;  %v1081_v59 = vpop.f32.mrf.mxu0 }
 0x453   : > { %v1093_v60 = vrot.slane %v1091_v32, 4  ;;  %v1097_v61 = vsel %vm547_vm5, %v1091_v32, %v1096_v56  ;;  %v1092_v1 = vmul.f32 %v1677_v57, %v1081_v59 }
 0x454   : > { %v1105_v2 = vperm.slane %v1097_v61, %v1910_v54 }
 0x455   : > { %v1095_v3 = vsel %vm547_vm5, %v1093_v60, %v1089_v48  ;;  %v1106_v4 = vrot.slane %v1092_v1, 4  ;;  %v1109_v5 = vsel %vm547_vm5, %v1092_v1, %v1108_v58 }
 0x456   : > { %v1101_v6 = vperm.slane %v1095_v3, %v1910_v54  ;;  %v1132_v7 = vrot.slane %v1105_v2, 4  ;;  %v1117_v9 = vperm.slane %v1109_v5, %v1910_v54 }
 0x457   : > { %v1107_v13 = vsel %vm547_vm5, %v1106_v4, %v1090_v53  ;;  %v1045_v11 = vpop.f32.mrf.mxu2 }
 0x458   : > { %v1120_v12 = vrot.slane %v1101_v6, 4  ;;  %v1113_v14 = vperm.slane %v1107_v13, %v1910_v54  ;;  %v1130_v15 = vrot.slane %v1117_v9, 4  ;;  %v1133_v62 = vsel %vm547_vm5, %v1117_v9, %v1132_v7  ;;  %v1064_v16 = vpop.f32.mrf.mxu3  ;;  %v1653_v11 = vld [vmem:[%s2189_s6] ss:$0 sm:$0xff] }
 0x459   : > { %v1141_v17 = vperm.slane %v1133_v62, %v1920_v10 }
 0x45a   : > { %v1118_v18 = vrot.slane %v1113_v14, 4  ;;  %v1121_v19 = vsel %vm547_vm5, %v1113_v14, %v1120_v12  ;;  %v1131_v20 = vsel %vm547_vm5, %v1130_v15, %v1105_v2  ;;  %v1083_v63 = vpop.f32.mrf.mxu0  ;;  %v1588_v2 = vld [vmem:[%s2188_s5] sm:$0xff] }
 0x45b   : > { %v1129_v21 = vperm.slane %v1121_v19, %v1920_v10  ;;  %v1137_v22 = vperm.slane %v1131_v20, %v1920_v10  ;;  %v1148_v23 = vrot.slane %v1141_v17, 4 }
 0x45c   : > { %v1119_v24 = vsel %vm547_vm5, %v1118_v18, %v1101_v6 }
 0x45d   : > { %v1125_v26 = vperm.slane %v1119_v24, %v1920_v10  ;;  %v1144_v27 = vrot.slane %v1129_v21, 4  ;;  %v1146_v28 = vrot.slane %v1137_v22, 4  ;;  %v1149_v29 = vsel %vm547_vm5, 0.0, %v1148_v23  ;;  %v1591_v21 = vld [vmem:[%s2192_s9 + $0x8] sm:$0xff] }
 0x45e   : > { %v1161_v30 = vsel %vm547_vm5, %v1148_v23, %v1137_v22  ;;  %v1166_v31 = vrot.slane %v1149_v29, 4  ;;  %1321 = vmatpush.bf16.msra.mxu2 %v1591_v21 }
 0x45f   : > { %v1145_v33 = vsel %vm547_vm5, 0.0, %v1144_v27  ;;  %v1142_v34 = vrot.slane %v1125_v26, 4  ;;  %v1147_v35 = vsel %vm547_vm5, 0.0, %v1146_v28  ;;  %v1150_v36 = vsel %vm547_vm5, %v1144_v27, %v1125_v26 }
 0x460   : > { %v1155_v37 = vrot.slane %v1145_v33, 4  ;;  %v1154_v38 = vperm.slane %v1150_v36, %v1910_v54  ;;  %v1165_v39 = vperm.slane %v1161_v30, %v1910_v54  ;;  %v1167_v40 = vsel %vm547_vm5, %v1166_v31, %v1147_v35  ;;  %v1654_v33 = vld [vmem:[%s2190_s7] ss:$0 sm:$0xff] }
 0x461   : > { %v1143_v41 = vsel %vm547_vm5, 0.0, %v1142_v34  ;;  %v1171_v42 = vperm.slane %v1167_v40, %v1910_v54  ;;  %v1598_v40 = vld [vmem:[%s2194_s11 + $0x30] sm:$0xff] }
 0x462   : > { %v1156_v43 = vsel %vm547_vm5, %v1155_v37, %v1143_v41  ;;  %v1174_v45 = vrot.slane %v1154_v38, 4  ;;  %v1186_v25 = vrot.slane %v1165_v39, 4  ;;  %v1597_v41 = vld [vmem:[%s2194_s11 + $0x28] sm:$0xff] }
 0x463   : > { %v1160_v46 = vperm.slane %v1156_v43, %v1910_v54  ;;  %v1184_v47 = vrot.slane %v1171_v42, 4  ;;  %v1595_v43 = vld [vmem:[%s2194_s11 + $0x18] sm:$0xff] }
 0x464   : > { %v1187_v44 = vsel %vm547_vm5, %v1171_v42, %v1186_v25  ;;  %v1596_v42 = vld [vmem:[%s2194_s11 + $0x20] sm:$0xff] }
 0x465   : > { %v1175_v49 = vsel %vm547_vm5, %v1160_v46, %v1174_v45  ;;  %v1195_v48 = vperm.slane %v1187_v44, %v1920_v10  ;;  %v1172_v50 = vrot.slane %v1160_v46, 4  ;;  %v1185_v51 = vsel %vm547_vm5, %v1184_v47, %v1165_v39  ;;  %v1599_v39 = vld [vmem:[%s2194_s11 + $0x38] sm:$0xff]  ;;  %v1594_v45 = vld [vmem:[%s2194_s11 + $0x10] sm:$0xff]  ;;  %v1656_v25 = vld [vmem:[%s2193_s10] ss:$0 sm:$0xff] }
 0x466   : > { %v1183_v52 = vperm.slane %v1175_v49, %v1920_v10  ;;  %v1191_v53 = vperm.slane %v1185_v51, %v1920_v10  ;;  %1418 = vmatpush.bf16.msra.mxu3 %v1599_v39  ;;  %v1593_v46 = vld [vmem:[%s2194_s11 + $0x8] sm:$0xff]  ;;  %v1592_v49 = vld [vmem:[%s2194_s11] sm:$0xff] }
 0x467   : > { %v1200_v55 = vrot.slane %v1195_v48, 4  ;;  %v1173_v56 = vsel %vm547_vm5, %v1172_v50, %v1154_v38 }
 0x468   : > { %v1202_v32 = vrot.slane %v1183_v52, 4  ;;  %v1179_v54 = vperm.slane %v1173_v56, %v1920_v10  ;;  %v1196_v57 = vrot.slane %v1191_v53, 4  ;;  %v1589_v10 = vld [vmem:[%s2188_s5 + $0x8] sm:$0xff] }
 0x469   : > { %v1201_v58 = vsel %vm547_vm5, %v1200_v55, %v1183_v52  ;;  %1251 = vmatpush.bf16.msra.mxu1 %v1589_v10 }
 0x46a   : > { %1209 = vrot.lane.b32.xlu0 %v1201_v58, %s1756_s24  ;;  %v1203_v59 = vsel %vm547_vm5, %v1195_v48, %v1202_v32  ;;  %v1198_v60 = vrot.slane %v1179_v54, 4  ;;  %v1197_v61 = vsel %vm547_vm5, %v1196_v57, %v1179_v54  ;;  %1419 = vmatpush.bf16.msra.mxu3 %v1598_v40  ;;  %s1512_s24 = sshll.u32 %s429_s1, 3 }
 0x46b   : > { %1213 = vrot.lane.b32.xlu2 %v1203_v59, %s1757_s30  ;;  %s1583_s30 = sshll.u32 %s1850_s29, 3  ;;  %s431_s23 = scalar_lea.vmem [#allocation2], %s1512_s24 }
 0x46c   : > { %v1199_v1 = vsel %vm547_vm5, %v1191_v53, %v1198_v60  ;;  %s1444_s22 = scalar_lea.hbm %s2196_s13, %s1583_s30  ;;  %s1446_s0 = sshll.u32 %s431_s23, 4  ;;  %s1447_s0 = int_to_ptr.vmem [resolvable:$true] %s1446_s0 }
 0x46d   : > { %1205 = vrot.lane.b32.xlu1 %v1199_v1, %s1758_s15  ;;  %1252 = vmatpush.bf16.msra.mxu1 %v1588_v2  ;;  %s1448_s2 = sshll.u32 %s1444_s22, 4  ;;  %s1434_s29 = scalar_lea.sflag [#allocation3], %s429_s1  ;;  %s1449_s2 = int_to_ptr.hbm [resolvable:$true] %s1448_s2 }
 0x46e   : > { %1420 = vmatpush.bf16.msra.mxu3 %v1597_v41  ;;  %s1698_s3 = sshra.s32 %s1449_s2, 4  ;;  %s1704_s24 = scalar_lea.hbm %s2196_s13, 16  ;;  %s1699_s3 = int_to_ptr.hbm [resolvable:$true] %s1698_s3 }
 0x46f   : > { %s1700_s15 = scalar_lea.hbm %s1699_s3, 8  ;;  %p1705_p0 = scmp.lt.s32.totalorder %s1699_s3, %s2196_s13 }
 0x470   : > { %p1701_p11 = scmp.ne.s32.totalorder %s1699_s3, %s1700_s15  ;;  %p1706_p1 = scmp.lt.s32.totalorder %s1704_s24, %s1700_s15 }
 0x472   : > { %1421 = vmatpush.bf16.msra.mxu3 %v1596_v42  ;;  %p1702_p12 = pnand %p1701_p11, %p1867_p5  ;;  %p1707_p2 = por %p1706_p1, %p1705_p0 }
 0x474   : > { %p1703_p13 = pneg %p1702_p12 }
 0x476   : > { %1422 = vmatpush.bf16.msra.mxu3 %v1595_v43  ;;  %p1708_p3 = pnand %p1707_p2, %p1703_p13 }
 0x47a   : > { %1423 = vmatpush.bf16.msra.mxu3 %v1594_v45 }
 0x47e   : > { %1424 = vmatpush.bf16.msra.mxu3 %v1593_v46 }
 0x482   : > { %1425 = vmatpush.bf16.msra.mxu3 %v1592_v49 }
 0x4c5   : > { %v1214_v6 = vpop.permute.xlu2 %1213 }
 0x4dc   : > { %v1210_v4 = vpop.permute.xlu0 %1209 }
 0x4df   : > { %v1206_v3 = vpop.permute.xlu1 %1205 }
 0x4e0   : > { %v1216_v5 = vsel %vm891_vm6, %v1197_v61, %v1206_v3  ;;  %v1657_v3 = vld [vmem:[%s2195_s12] ss:$0 sm:$0xff] }
 0x4e1   : > { %v1218_v7 = vsel %vm1217_vm8, %v1216_v5, %v1210_v4 }
 0x4e2   : > { %v1220_v9 = vsel %vm1219_vm9, %v1218_v7, %v1214_v6 }
 0x4e3   : > { %v1221_v13 = vpack.c.bf16 %v1220_v9, %v1220_v9 }
 0x4e5   : > { %1539 = vmatmul.msk.bf16.vlgmr.msra.gmra.mxu1 %vm440_vm0, %v1221_v13 }
 0x562   : > { %v1254_v12 = vpop.f32.mrf.mxu1 }
 0x563   : > { %v1255_v14 = vadd.f32 %v1653_v11, %v1254_v12 }
 0x565   : > { %v2098_v15 = vadd.f32 %v1255_v14, %v1882_v0  ;;  %v1590_v0 = vld [vmem:[%s2192_s9] sm:$0xff] }
 0x566   : > { %1322 = vmatpush.bf16.msra.mxu2 %v1590_v0 }
 0x567   : > { %v1261_v62 = vsel %vm440_vm0, %v2098_v15, 0.0 }
 0x568   : > { %1262 = vadd.xlane.f32.xlu0 %v1261_v62 }
 0x56a   : > { %v1256_v16 = vpop.f32.mrf.mxu1 }
 0x5db   : > { %v1263_v17 = vpop.xlane.xlu0 %1262 }
 0x5dc   : > { %v1264_v18 = vmul.f32 %v1263_v17, %v1886_v8 }
 0x5de   : > { %v1265_v19 = vsub.f32 %v2098_v15, %v1264_v18 }
 0x5e0   : > { %v1266_v20 = vmul.f32 %v1265_v19, %v1265_v19 }
 0x5e2   : > { %v1267_v63 = vsel %vm440_vm0, %v1266_v20, 0.0 }
 0x5e3   : > { %1268 = vadd.xlane.f32.xlu1 %v1267_v63 }
 0x656   : > { %v1269_v22 = vpop.xlane.xlu1 %1268 }
 0x657   : > { %v1270_v23 = vmul.f32 %v1269_v22, %v1886_v8  ;;  %v1655_v8 = vld [vmem:[%s2191_s8] ss:$0 sm:$0xff] }
 0x659   : > { %v1271_v24 = vadd.f32 1e-05, %v1270_v23 }
 0x65b   : > { %1678 = vrsqrt.f32 %v1271_v24  ;;  %vm1278_vm11 = vweird.f32 %v1271_v24 }
 0x661   : > { %v1679_v26 = vpop.eup %1678 }
 0x662   : > { %v1273_v27 = vmul.f32 %v1679_v26, %v1271_v24  ;;  %vm1279_vm10 = vweird.f32 %v1679_v26 }
 0x663   : > { %vm1280_vm12 = vmor %vm1278_vm11, %vm1279_vm10 }
 0x664   : > { %v1274_v28 = vmul.f32 %v1679_v26, %v1273_v27 }
 0x666   : > { %v1275_v29 = vmul.f32 0.5, %v1274_v28 }
 0x668   : > { %v1276_v30 = vsub.f32 1.5, %v1275_v29 }
 0x66a   : > { %v1277_v31 = vmul.f32 %v1679_v26, %v1276_v30 }
 0x66c   : > { %v1281_v34 = vsel %vm1280_vm12, %v1679_v26, %v1277_v31 }
 0x66d   : > { %v1282_v35 = vmul.f32 %v1281_v34, %v1265_v19 }
 0x66f   : > { %v1286_v36 = vmul.f32 %v1654_v33, %v1282_v35 }
 0x671   : > { %v1290_v37 = vadd.f32 %v1655_v8, %v1286_v36 }
 0x673   : > { %v1291_v38 = vpack.c.bf16 %v1290_v37, %v1290_v37 }
 0x675   : > { %1548 = vmatmul.msk.bf16.vlgmr.msra.gmra.mxu2 %vm440_vm0, %v1291_v38 }
 0x6f8   : > { %v1324_v47 = vpop.f32.mrf.mxu2 }
 0x6f9   : > { %v1325_v44 = vadd.f32 %v1656_v25, %v1324_v47 }
 0x6fb   : > { %v1549_v48 = vmul.f32 -1.702, %v1325_v44 }
 0x6fd   : > { %v1330_v50 = vmul.f32 1.442695, %v1549_v48 }
 0x6ff   : > { %1680 = vpow2.f32 %v1330_v50 }
 0x700   : > { %v1326_v51 = vpop.f32.mrf.mxu2 }
 0x705   : > { %v1681_v52 = vpop.eup %1680 }
 0x706   : > { %v1332_v53 = vadd.f32 1.0, %v1681_v52 }
 0x708   : > { %1682 = vrcp.f32 %v1332_v53  ;;  %v1344_v54 = vand.u32 2147483648, %v1332_v53  ;;  %v1342_v58 = vand.u32 2147483647, %v1332_v53  ;;  %vm1338_vm14 = vweird.f32 %v1332_v53 }
 0x70a   : > { %v1345_v60 = vor.u32 1.1754944e-38, %v1344_v54  ;;  %vm1343_vm1 = vcmp.eq.f32.partialorder %v1342_v58, 8.507059e+37 }
 0x70e   : > { %v1683_v55 = vpop.eup %1682 }
 0x70f   : > { %v1334_v56 = vmul.f32 %v1683_v55, %v1332_v53  ;;  %vm1339_vm13 = vweird.f32 %v1683_v55 }
 0x710   : > { %vm1340_vm15 = vmor %vm1338_vm14, %vm1339_vm13 }
 0x711   : > { %v1335_v32 = vsub.f32 1.0, %v1334_v56 }
 0x713   : > { %v1336_v57 = vmul.f32 %v1683_v55, %v1335_v32 }
 0x715   : > { %v1337_v59 = vadd.f32 %v1683_v55, %v1336_v57 }
 0x717   : > { %v1341_v61 = vsel %vm1340_vm15, %v1683_v55, %v1337_v59 }
 0x718   : > { %v1346_v1 = vsel %vm1343_vm1, %v1345_v60, %v1341_v61 }
 0x719   : > { %v1348_v10 = vmul.f32 %v1346_v1, %v1325_v44 }
 0x71b   : > { %v1349_v2 = vpack.c.bf16 %v1348_v10, %v1348_v10 }
 0x71d   : > { %1426 = vmatmul.bf16.vlgmr.msra.gmra.mxu3 %v1349_v2 }
 0x7a0   : > { %v1427_v4 = vpop.f32.mrf.mxu3 }
 0x7a1   : > { %v1428_v5 = vadd.f32 %v1657_v3, %v1427_v4 }
 0x7a3   : > { %v1431_v6 = vadd.f32 %v1428_v5, %v2098_v15 }
 0x7a5   : > { %1432 = vst.msk [vmem:[%s431_s23] sm:$0xff] %vm440_vm0, %v1431_v6 }
 0x7a6   : > { %1711 = shalt.err (!%p1708_p3)
}
 0x7a7   : > { %1600 = dma.vmem_to_hbm [thread:$0]  (%p1867_p5), %s1447_s0, 128, %s1449_s2, %s1434_s29  }
 0x7a8   : > { %v1429_v7 = vpop.f32.mrf.mxu3 }
 0x7a9 PF: > { %p1606_p4 = scmp.ge.s32.totalorder %s1746_s28, 2  ;;  %s1460_s1 = sand.u32 1, %s1734_s25  }
 0x7aa   : > { %s1461_s22 = scalar_lea.sflag [#allocation3], %s1460_s1 }
 0x7ab   : > { %p1603_p7 = pnand %p1606_p4, %p1871_p6 }
 0x7ad   : > { %p1604_p8 = pneg %p1603_p7 }
 0x7af   : > { %1729 = dma.done.wait (%p1604_p8), %s1461_s22, 128  }
 0x7b0   : > { %1731 = vsyncadd (%p1604_p8), %s1461_s22, 4294967168  ;;  %p23_p9 = scmp.ge.s32.totalorder %s1854_s14, 4   ;;  %s2207_s25 = smov %s1738_s26 }
 0x7b1   : > { %s2208_s26 = smov %s1742_s27  ;;  %s2209_s27 = smov %s1865_s17 }
 0x7b2   : > { %s2210_s28 = smov %s1854_s14  ;;  %25 = sbr.rel (!%p23_p9) target bundleno = 8 (0x8), region = 107 }
 0x7b7   :  { %1467 = vsyncpa [#allocation3], 1 }
 0x7b8   :  { %1469 = vsyncpa [#allocation3 + $0x1], 1 }

</bundles_post_ra>
